<compile_context>
chip_gen: v5e
topology: v5e:2x2
jax: 0.10.0
libtpu: 0.0.40
codegen_flags: <defaults>
</compile_context>

<pallas_src>
import functools

import jax
import jax.numpy as jnp
from jax.experimental import pallas as pl
from jax.experimental.pallas import tpu as pltpu

_IGNORE_INDEX = -100


def _ce_partial_kernel(logits_ref, target_ref, out_ref, *, n_total):
    # logits_ref: (TN, C) float (f32 or bf16)   | target_ref: (TN, 1) int32
    # out_ref:    (1, 8, 128) f32 per-tile partials:
    #             [0, 0, 0] = sum of masked NLL, [0, 0, 1] = count of valid rows
    i = pl.program_id(0)

    x = logits_ref[...].astype(jnp.float32)          # (TN, C); upcast free on VPU
    t = target_ref[...]                              # (TN, 1) int32
    tn, c = x.shape

    # One-hot of the target class (ignore_index / garbage targets never matter:
    # they are either != every column or masked out by `valid` below).
    col = jax.lax.broadcasted_iota(jnp.int32, (tn, c), 1)
    onehot = col == t                                # (TN, C)

    # Numerically stable log-sum-exp per row (compiler masks the lane pad of
    # the partial last tile, so no explicit class-dim masking is needed).
    m = jnp.max(x, axis=-1, keepdims=True)                              # (TN, 1)
    lse = m + jnp.log(jnp.sum(jnp.exp(x - m), axis=-1, keepdims=True))  # (TN, 1)

    # Gather the logit of the target class via a masked reduction.
    x_tgt = jnp.sum(jnp.where(onehot, x, 0.0), axis=-1, keepdims=True)  # (TN, 1)

    # Valid rows: target != ignore_index AND inside the logical batch.  The
    # last grid block may be ragged; its tail rows hold unspecified data, so
    # use a select (where), never multiply-by-mask, to keep NaN/inf out.
    row = jax.lax.broadcasted_iota(jnp.int32, (tn, 1), 0)
    in_range = (i * tn + row) < n_total
    valid = jnp.logical_and(t != _IGNORE_INDEX, in_range)

    nll = jnp.where(valid, lse - x_tgt, 0.0)

    part_sum = jnp.sum(nll)
    part_cnt = jnp.sum(valid.astype(jnp.float32))

    # Lane-dense (8, 128) output tile -> unmasked full-width store.
    sub = jax.lax.broadcasted_iota(jnp.int32, (1, 8, 128), 1)
    lane = jax.lax.broadcasted_iota(jnp.int32, (1, 8, 128), 2)
    out_ref[...] = jnp.where(
        jnp.logical_and(sub == 0, lane == 0), part_sum,
        jnp.where(jnp.logical_and(sub == 0, lane == 1), part_cnt, 0.0))


def cifar100_loss(logits, targets, *, row_tile=4096):
    """Cross-entropy loss (mean, ignore_index=-100) via a Pallas TPU kernel.

    logits:  (N, C) float array (f32 or bf16 -- kept in its HBM dtype)
    targets: (N,)   int array of class indices (or -100 to ignore)
    returns: scalar float32 loss
    """
    n, c = logits.shape

    if n <= row_tile:
        # One block covering all rows; block dim == full array dim is always
        # legal even when N is not a multiple of 8.
        tn = n
    else:
        # (8, 128) rule: sublane block dim must be a multiple of 8. The tail
        # block may then be ragged; the kernel masks rows >= N itself.
        tn = max(8, (row_tile // 8) * 8)
    grid_n = pl.cdiv(n, tn)

    t2d = targets.astype(jnp.int32).reshape(n, 1)

    kernel = functools.partial(_ce_partial_kernel, n_total=n)
    partials = pl.pallas_call(
        kernel,
        out_shape=jax.ShapeDtypeStruct((grid_n, 8, 128), jnp.float32),
        grid=(grid_n,),
        in_specs=[
            pl.BlockSpec((tn, c), lambda i: (i, 0)),   # full class dim: no pad
            pl.BlockSpec((tn, 1), lambda i: (i, 0)),   # lane-pads in VMEM only
        ],
        # Each grid step owns its own output block -> no cross-step state, so
        # the axis is truly parallel (v7x runtime may split it across both TCs).
        out_specs=pl.BlockSpec((1, 8, 128), lambda i: (i, 0, 0)),
        compiler_params=pltpu.CompilerParams(
            dimension_semantics=("parallel",),
            # 2x buffered f32 logits + 2x lane-padded targets at tn=4096 is
            # ~8 MiB; 32 MiB leaves headroom on every generation (v7x: 64 MiB
            # physical).
            vmem_limit_bytes=32 * 1024 * 1024,
        ),
    )(logits, t2d)

    total = jnp.sum(partials[:, 0, 0])
    count = jnp.sum(partials[:, 0, 1])
    # 0/0 -> NaN when every target is ignored, matching torch semantics.
    return total / count


if __name__ == "__main__":
    key = jax.random.PRNGKey(0)
    k_logits, k_tgt, k_logits2, k_tgt2 = jax.random.split(key, 4)

    batch, num_classes = 8, 100  # CIFAR-100 -> 100 classes
    logits = jax.random.normal(k_logits, (batch, num_classes), dtype=jnp.float32)
    targets = jax.random.randint(k_tgt, (batch,), 0, num_classes, dtype=jnp.int32)

    logz = jax.nn.log_softmax(logits, axis=-1)

    # case 1: no ignored targets
    loss = cifar100_loss(logits, targets)
    jax.block_until_ready(loss)
    ref = -jnp.mean(jnp.take_along_axis(logz, targets[:, None], axis=-1))
    assert jnp.allclose(loss, ref, rtol=1e-5, atol=1e-5), (loss, ref)

    # case 2: exercise the ignore_index=-100 masking path
    targets_ig = targets.at[1].set(_IGNORE_INDEX).at[5].set(_IGNORE_INDEX)
    loss_ig = cifar100_loss(logits, targets_ig)
    jax.block_until_ready(loss_ig)
    valid = targets_ig != _IGNORE_INDEX
    safe_t = jnp.where(valid, targets_ig, 0)
    nll = -jnp.take_along_axis(logz, safe_t[:, None], axis=-1)[:, 0]
    ref_ig = jnp.sum(jnp.where(valid, nll, 0.0)) / jnp.sum(valid)
    assert jnp.allclose(loss_ig, ref_ig, rtol=1e-5, atol=1e-5), (loss_ig, ref_ig)

    # case 3: multi-tile grid with a ragged tail block (N=20 not divisible by
    # the 8-row tile) plus ignore_index -- exercises the in-kernel row masking
    # that replaced the wrapper-side padding.
    n3 = 20
    logits3 = jax.random.normal(k_logits2, (n3, num_classes), dtype=jnp.float32)
    targets3 = jax.random.randint(k_tgt2, (n3,), 0, num_classes, dtype=jnp.int32)
    targets3 = targets3.at[3].set(_IGNORE_INDEX).at[17].set(_IGNORE_INDEX)
    loss3 = cifar100_loss(logits3, targets3, row_tile=8)
    jax.block_until_ready(loss3)
    logz3 = jax.nn.log_softmax(logits3, axis=-1)
    valid3 = targets3 != _IGNORE_INDEX
    safe_t3 = jnp.where(valid3, targets3, 0)
    nll3 = -jnp.take_along_axis(logz3, safe_t3[:, None], axis=-1)[:, 0]
    ref3 = jnp.sum(jnp.where(valid3, nll3, 0.0)) / jnp.sum(valid3)
    assert jnp.allclose(loss3, ref3, rtol=1e-5, atol=1e-5), (loss3, ref3)

    print("KERNEL_OK")
</pallas_src>

<mosaic_0001>
module attributes {stable_mosaic.version = 11 : i64} {
  func.func @_ce_partial_kernel(%arg0: i32, %arg1: memref<8x100xf32, #tpu.memory_space<vmem>>, %arg2: memref<8x1xi32, #tpu.memory_space<vmem>>, %arg3: memref<1x8x128xf32, #tpu.memory_space<vmem>>) attributes {dimension_semantics = [#tpu.dimension_semantics<parallel>], iteration_bounds = array<i64: 1>, scalar_prefetch = 0 : i64, scratch_operands = 0 : i64, tpu.core_type = #tpu.core_type<tc>, window_params = [{transform_indices = @transform_0, window_bounds = array<i64: 8, 100>}, {transform_indices = @transform_1, window_bounds = array<i64: 8, 1>}, {transform_indices = @transform_2, window_bounds = array<i64: 1, 8, 128>}]} {
    %c0 = arith.constant 0 : index
    %c0_0 = arith.constant 0 : index
    %0 = vector.load %arg1[%c0, %c0_0] : memref<8x100xf32, #tpu.memory_space<vmem>>, vector<8x100xf32>
    %c0_1 = arith.constant 0 : index
    %c0_2 = arith.constant 0 : index
    %1 = vector.load %arg2[%c0_1, %c0_2] : memref<8x1xi32, #tpu.memory_space<vmem>>, vector<8x1xi32>
    %2 = tpu.iota {dimensions = array<i32: 1>} : vector<8x100xi32>
    %3 = vector.broadcast %1 : vector<8x1xi32> to vector<8x100xi32>
    %4 = arith.cmpi eq, %2, %3 : vector<8x100xi32>
    %cst = arith.constant dense<0xFF800000> : vector<8xf32>
    %5 = vector.multi_reduction <maximumf>, %0, %cst [1] : vector<8x100xf32> to vector<8xf32>
    %6 = vector.shape_cast %5 : vector<8xf32> to vector<8x1xf32>
    %7 = vector.broadcast %6 : vector<8x1xf32> to vector<8x100xf32>
    %8 = arith.subf %0, %7 : vector<8x100xf32>
    %9 = math.exp %8 : vector<8x100xf32>
    %cst_3 = arith.constant dense<0.000000e+00> : vector<8xf32>
    %10 = vector.multi_reduction <add>, %9, %cst_3 [1] : vector<8x100xf32> to vector<8xf32>
    %11 = vector.shape_cast %10 : vector<8xf32> to vector<8x1xf32>
    %12 = math.log %11 : vector<8x1xf32>
    %13 = arith.addf %6, %12 : vector<8x1xf32>
    %cst_4 = arith.constant 0.000000e+00 : f32
    %14 = vector.broadcast %cst_4 : f32 to vector<8x100xf32>
    %15 = arith.select %4, %0, %14 : vector<8x100xi1>, vector<8x100xf32>
    %cst_5 = arith.constant dense<0.000000e+00> : vector<8xf32>
    %16 = vector.multi_reduction <add>, %15, %cst_5 [1] : vector<8x100xf32> to vector<8xf32>
    %17 = vector.shape_cast %16 : vector<8xf32> to vector<8x1xf32>
    %18 = tpu.iota {dimensions = array<i32: 0>} : vector<8x1xi32>
    %c8_i32 = arith.constant 8 : i32
    %19 = arith.muli %arg0, %c8_i32 : i32
    %20 = vector.broadcast %19 : i32 to vector<8x1xi32>
    %21 = arith.addi %20, %18 : vector<8x1xi32>
    %c8_i32_6 = arith.constant 8 : i32
    %22 = vector.broadcast %c8_i32_6 : i32 to vector<8x1xi32>
    %23 = arith.cmpi slt, %21, %22 : vector<8x1xi32>
    %c-100_i32 = arith.constant -100 : i32
    %24 = vector.broadcast %c-100_i32 : i32 to vector<8x1xi32>
    %25 = arith.cmpi ne, %1, %24 : vector<8x1xi32>
    %26 = arith.andi %25, %23 : vector<8x1xi1>
    %27 = arith.subf %13, %17 : vector<8x1xf32>
    %cst_7 = arith.constant 0.000000e+00 : f32
    %28 = vector.broadcast %cst_7 : f32 to vector<8x1xf32>
    %29 = arith.select %26, %27, %28 : vector<8x1xi1>, vector<8x1xf32>
    %30 = vector.shape_cast %29 : vector<8x1xf32> to vector<1x8x1xf32>
    %cst_8 = arith.constant dense<0.000000e+00> : vector<1xf32>
    %31 = vector.multi_reduction <add>, %30, %cst_8 [1, 2] : vector<1x8x1xf32> to vector<1xf32>
    %32 = vector.shape_cast %31 : vector<1xf32> to vector<1x1x1xf32>
    %33 = vector.extract %32[0, 0, 0] : f32 from vector<1x1x1xf32>
    %34 = arith.extui %26 : vector<8x1xi1> to vector<8x1xi32>
    %35 = arith.sitofp %34 : vector<8x1xi32> to vector<8x1xf32>
    %36 = vector.shape_cast %35 : vector<8x1xf32> to vector<1x8x1xf32>
    %cst_9 = arith.constant dense<0.000000e+00> : vector<1xf32>
    %37 = vector.multi_reduction <add>, %36, %cst_9 [1, 2] : vector<1x8x1xf32> to vector<1xf32>
    %38 = vector.shape_cast %37 : vector<1xf32> to vector<1x1x1xf32>
    %39 = vector.extract %38[0, 0, 0] : f32 from vector<1x1x1xf32>
    %40 = tpu.iota {dimensions = array<i32: 1>} : vector<1x8x128xi32>
    %41 = tpu.iota {dimensions = array<i32: 2>} : vector<1x8x128xi32>
    %c0_i32 = arith.constant 0 : i32
    %42 = vector.broadcast %c0_i32 : i32 to vector<1x8x128xi32>
    %43 = arith.cmpi eq, %40, %42 : vector<1x8x128xi32>
    %c0_i32_10 = arith.constant 0 : i32
    %44 = vector.broadcast %c0_i32_10 : i32 to vector<1x8x128xi32>
    %45 = arith.cmpi eq, %41, %44 : vector<1x8x128xi32>
    %46 = arith.andi %43, %45 : vector<1x8x128xi1>
    %c0_i32_11 = arith.constant 0 : i32
    %47 = vector.broadcast %c0_i32_11 : i32 to vector<1x8x128xi32>
    %48 = arith.cmpi eq, %40, %47 : vector<1x8x128xi32>
    %c1_i32 = arith.constant 1 : i32
    %49 = vector.broadcast %c1_i32 : i32 to vector<1x8x128xi32>
    %50 = arith.cmpi eq, %41, %49 : vector<1x8x128xi32>
    %51 = arith.andi %48, %50 : vector<1x8x128xi1>
    %cst_12 = arith.constant 0.000000e+00 : f32
    %52 = vector.broadcast %39 : f32 to vector<1x8x128xf32>
    %53 = vector.broadcast %cst_12 : f32 to vector<1x8x128xf32>
    %54 = arith.select %51, %52, %53 : vector<1x8x128xi1>, vector<1x8x128xf32>
    %55 = vector.broadcast %33 : f32 to vector<1x8x128xf32>
    %56 = arith.select %46, %55, %54 : vector<1x8x128xi1>, vector<1x8x128xf32>
    %c0_13 = arith.constant 0 : index
    %c0_14 = arith.constant 0 : index
    %c0_15 = arith.constant 0 : index
    %57 = vector.load %arg3[%c0_13, %c0_14, %c0_15] : memref<1x8x128xf32, #tpu.memory_space<vmem>>, vector<1x8x128xf32>
    tpu.vector_store %arg3[%c0_13, %c0_14, %c0_15], %56 {strides = array<i32>} : memref<1x8x128xf32, #tpu.memory_space<vmem>>, vector<1x8x128xf32>,
    return
  }
  func.func @transform_0(%arg0: i32) -> (i32, i32) {
    %c0_i32 = arith.constant 0 : i32
    %c0_i32_0 = arith.constant 0 : i32
    return %arg0, %c0_i32 : i32, i32
  }
  func.func @transform_1(%arg0: i32) -> (i32, i32) {
    %c0_i32 = arith.constant 0 : i32
    %c0_i32_0 = arith.constant 0 : i32
    return %arg0, %c0_i32 : i32, i32
  }
  func.func @transform_2(%arg0: i32) -> (i32, i32, i32) {
    %c0_i32 = arith.constant 0 : i32
    %c0_i32_0 = arith.constant 0 : i32
    %c0_i32_1 = arith.constant 0 : i32
    return %arg0, %c0_i32, %c0_i32_0 : i32, i32, i32
  }
}

</mosaic_0001>

<bundles_post_ra>
// kernel: tpu_custom_call.1
= control target key start
LH: loop header
LB: loop body
LE: loop exit
PB: predicated region body
PF: predicated region fallthrough
CT: control target
= control target key end

     0   :  { %vm20_vm0 = vcmask 818176   ;;  %s165_s0 = inlined_call_operand.vmem [shape: f32[8,100], index: 0, kind: input, shape index: {}]   ;;  %s166_s1 = inlined_call_operand.vmem [shape: s32[8,1], index: 1, kind: input, shape index: {}]   ;;  %s167_s2 = inlined_call_operand.hbm [shape: f32[1,8,128], index: 2, kind: output, shape index: {}]  }
   0x1   :  { %v12_v0 = vld [vmem:[%s165_s0] sm:$0xff] }
   0x2   :  { %7 = vsyncpa [#allocation3], 0  ;;  %v21_v1 = vsel %vm20_vm0, %v12_v0, -inf  ;;  %v135_v2 = vmov 0   ;;  %v13_v3 = vld [vmem:[%s166_s1] sm:$0xff]  ;;  %v14_v9 = vlaneseq  ;;  %vm47_vm3 = vcmask 7168  }
   0x3   :  { %104 = vset.pattern.permute.xlu0 %v135_v2  ;;  %vm43_vm2 = vcmp.ne.s32.totalorder %v13_v3, 4294967196  ;;  %v136_v22 = vmov 0.0   ;;  %s137_s0 = smov [#allocation2]   ;;  %s87_s16 = sshll.u32 %s167_s2, 4  ;;  %s88_s16 = int_to_ptr.hbm [resolvable:$true] %s87_s16 }
   0x4   :  { %22 = vmax.xlane.f32.xlu0 %v21_v1  ;;  %v15_v10 = vand.u32 127, %v14_v9  ;;  %v96_v23 = vsel %vm43_vm2, 1.0, %v136_v22  ;;  %v38_v39 = vshrl.u32 %v14_v9, 7  ;;  %s85_s1 = sshll.u32 %s137_s0, 4  ;;  %s86_s1 = int_to_ptr.vmem [resolvable:$true] %s85_s1 }
   0x5   :  { %v60_v24 = vsel %vm47_vm3, %v96_v23, 0.0 }
   0x6   :  { %vm70_vm4 = vcmp.eq.s32.totalorder %v38_v39, 0  ;;  %vm73_vm5 = vcmp.eq.s32.totalorder %v15_v10, 1  ;;  %vm71_vm6 = vcmp.eq.s32.totalorder %v15_v10, 0 }
   0x7   :  { %vm74_vm7 = vmand %vm70_vm4, %vm73_vm5 }
   0x8   :  { %vm72_vm8 = vmand %vm70_vm4, %vm71_vm6 }
  0x18   :  { %17 = vperm.xlu0 %104, %v13_v3  }
  0x77   :  { %v23_v4 = vpop.xlane.xlu0 %22 }
  0x78   :  { %v24_v5 = vsub.f32 %v12_v0, %v23_v4 }
  0x7a   :  { %v25_v6 = vmul.f32 1.442695, %v24_v5 }
  0x7c   :  { %105 = vpow2.f32 %v25_v6 }
  0x82   :  { %v106_v7 = vpop.eup %105 }
  0x83   :  { %v27_v8 = vsel %vm20_vm0, %v106_v7, 0.0 }
  0x84   :  { %28 = vadd.xlane.f32.xlu1 %v27_v8 }
  0x8a   :  { %v18_v11 = vpop.permute.xlu0 %17 }
  0x8b   :  { %vm19_vm1 = vcmp.eq.s32.totalorder %v15_v10, %v18_v11 }
  0x8c   :  { %v33_v12 = vsel %vm19_vm1, %v12_v0, 0.0 }
  0x8d   :  { %v34_v13 = vsel %vm20_vm0, %v33_v12, 0.0 }
  0x8e   :  { %35 = vadd.xlane.f32.xlu1 %v34_v13 }
  0xf7   :  { %v29_v14 = vpop.xlane.xlu1 %28 }
  0xf8   :  { %107 = vlog2.f32 %v29_v14 }
  0xfe   :  { %v108_v15 = vpop.eup %107 }
  0xff   :  { %v31_v16 = vmul.f32 0.6931472, %v108_v15 }
 0x101   :  { %v32_v17 = vadd.f32 %v31_v16, %v23_v4  ;;  %v36_v18 = vpop.xlane.xlu1 %35 }
 0x103   :  { %v45_v19 = vsub.f32 %v32_v17, %v36_v18 }
 0x105   :  { %v46_v20 = vsel %vm43_vm2, %v45_v19, 0.0 }
 0x106   :  { %v48_v21 = vsel %vm47_vm3, %v46_v20, 0.0 }
 0x107   :  { %49 = vadd.xlane.f32.xlu2 %v48_v21 }
 0x10f   :  { %61 = vadd.xlane.f32.xlu2 %v60_v24 }
 0x17a   :  { %v50_v25 = vpop.xlane.xlu2 %49 }
 0x17b   :  { %v51_v26 = vrot.slane %v50_v25, 4 }
 0x17d   :  { %v52_v27 = vadd.f32 %v51_v26, %v50_v25 }
 0x17f   :  { %v53_v28 = vrot.slane %v52_v27, 2 }
 0x181   :  { %v54_v29 = vadd.f32 %v53_v28, %v52_v27 }
 0x182   :  { %v62_v30 = vpop.xlane.xlu2 %61 }
 0x183   :  { %v63_v31 = vrot.slane %v62_v30, 4  ;;  %v55_v32 = vrot.slane %v54_v29, 1 }
 0x185   :  { %v64_v33 = vadd.f32 %v63_v31, %v62_v30  ;;  %v56_v34 = vadd.f32 %v55_v32, %v54_v29 }
 0x187   :  { %v65_v35 = vrot.slane %v64_v33, 2  ;;  %97 = vpush %v56_v34 }
 0x189   :  { %v66_v36 = vadd.f32 %v65_v35, %v64_v33 }
 0x18b   :  { %v67_v37 = vrot.slane %v66_v36, 1 }
 0x18d   :  { %v68_v38 = vadd.f32 %v67_v37, %v66_v36 }
 0x18f   :  { %99 = vpush %v68_v38 }
 0x1b8   :  { %s98_s13 = spop %97 }
 0x1b9   :  { %v77_v41 = vstv %s98_s13 }
 0x1c0   :  { %s100_s17 = spop %99 }
 0x1c1   :  { %v75_v40 = vstv %s100_s17 }
 0x1c2   :  { %v76_v42 = vsel %vm74_vm7, %v75_v40, 0.0 }
 0x1c3   :  { %v78_v43 = vsel %vm72_vm8, %v77_v41, %v76_v42 }
 0x1c4   :  { %79 = vst [vmem:[#allocation2] sm:$0xff] %v78_v43 }
 0x1c5   :  { %90 = dma.vmem_to_hbm [thread:$0]  %s86_s1, 128, %s88_s16, [#allocation3]  }
 0x1c6   :  { %133 = dma.done.wait [#allocation3], 128  }
 0x1c7   :  { %134 = vsyncadd [#allocation3], 4294967168 }
 0x1c8   :  { %95 = vsyncpa [#allocation3], 1 }

</bundles_post_ra>
